<compile_context>
chip_gen: v7x
topology: tpu7x:2x2x1
jax: 0.10.0
libtpu: 0.0.40
codegen_flags: <defaults>
</compile_context>

<pallas_src>
import jax
import jax.numpy as jnp
from jax.experimental import pallas as pl
from jax.experimental.pallas import tpu as pltpu


# ---------------------------------------------------------------------------
# Kernels
# ---------------------------------------------------------------------------

def _take_kernel(x_ref, scores_ref, pool_ref, b_ref, o_ref):
    """Primary path: direct vectorized gather from the resident score row.

    x_ref:      (1, tb*S)  int16/int32  lane-dense token ids for this batch tile
    scores_ref: (1, V)     f32          resident folded scores = (E @ w^T) / S
    pool_ref:   (tb*S, tb) f32          resident 0/1 segment-sum mask
    b_ref:      (1, 1)     f32          fc bias (SMEM scalar)
    o_ref:      (1, tb)    f32          lane-dense outputs for this batch tile
    """
    ids = x_ref[...].astype(jnp.int32)                                # (1, bs)
    # O(bs) lane gather; no V factor in compute, vregs or per-step DMA.
    # TODO(synk): for very large V (>~100k) store scores 2D as (ceil(V/128), 128)
    # and gather two-level (row=id>>7, lane=id&127) to avoid the 8x sublane
    # padding of a (1, V) row in VMEM.
    tok = jnp.take_along_axis(scores_ref[...], ids, axis=1)           # (1, bs)
    # Segmented sum over each example's S tokens (0/1 mask precomputed in the
    # wrapper; 1/S is already folded into the scores).
    out = jnp.dot(tok, pool_ref[...], preferred_element_type=jnp.float32)
    o_ref[...] = out + b_ref[0, 0]


def _onehot_kernel(x_ref, scores_ref, pool_ref, b_ref, o_ref):
    """Fallback path: V-tiled one-hot gather on the MXU, output as accumulator.

    Grid = (batch tiles, V tiles); the V axis is the innermost reduction
    ("arbitrary") axis and the output block stays resident across it, so VMEM
    holds only a (vt, bs) one-hot tile instead of the full (V, bs) one.
    """
    k = pl.program_id(1)

    @pl.when(k == 0)
    def _():
        o_ref[...] = jnp.zeros_like(o_ref) + b_ref[0, 0]

    vt = scores_ref.shape[1]
    bs = x_ref.shape[1]
    v_iota = k * vt + jax.lax.broadcasted_iota(jnp.int32, (vt, bs), 0)
    # TODO(synk): build the one-hot in bf16 on v6e/v7x (bf16 VPU + 2x256 MXU) to
    # halve the compare/select/cast traffic; keep f32 on v5e (no bf16 VPU).
    onehot_t = (x_ref[...] == v_iota).astype(jnp.float32)             # (vt, bs)
    tok = jnp.dot(scores_ref[...], onehot_t,
                  preferred_element_type=jnp.float32)                 # (1, bs)
    o_ref[...] += jnp.dot(tok, pool_ref[...],
                          preferred_element_type=jnp.float32)         # (1, tb)


# ---------------------------------------------------------------------------
# Wrapper helpers
# ---------------------------------------------------------------------------

def _default_batch_tile(B, S):
    """Single full tile at small scale; for large B use lane-aligned 128-multiple
    tiles sized to ~1 MB of tokens with >= 2 grid steps (both v7x TCs busy)."""
    if B < 256 or B % 256 != 0:
        return B
    target_tokens = (1 << 20) // 4                      # ~1 MB of int32 tokens
    tb = max(128, (target_tokens // S) // 128 * 128)
    tb = min(tb, B // 2)                                # at least 2 grid steps
    while B % tb != 0:
        tb -= 128
    return max(tb, 128)


def _segment_pool(tb, S):
    """(tb*S, tb) 0/1 mask: pool[t, b] = 1 iff token t belongs to example b.

    Precomputed once in the wrapper (resident input), never rebuilt per step.
    TODO(synk): for very long tb*S replace this (it scales as bs*tb*4 bytes in
    VMEM) with a log2(S) pltpu.roll add-tree / position-major slice sums.
    """
    t = jnp.arange(tb * S, dtype=jnp.int32) // S
    b = jnp.arange(tb, dtype=jnp.int32)
    return (t[:, None] == b[None, :]).astype(jnp.float32)


def _forward_take(x_tokens, scores, bias, B, S, tb):
    V = scores.shape[1]
    tok_dtype = jnp.int16 if V <= 32767 else jnp.int32   # halve token HBM traffic
    x_flat = x_tokens.reshape(1, B * S).astype(tok_dtype)
    pool = _segment_pool(tb, S)
    out_row = pl.pallas_call(
        _take_kernel,
        out_shape=jax.ShapeDtypeStruct((1, B), jnp.float32),
        grid=(B // tb,),
        in_specs=[
            pl.BlockSpec((1, tb * S), lambda i: (0, i)),          # token tile
            pl.BlockSpec(memory_space=pltpu.MemorySpace.VMEM),    # scores: resident, single copy
            pl.BlockSpec(memory_space=pltpu.MemorySpace.VMEM),    # pool mask: resident, single copy
            pl.BlockSpec(memory_space=pltpu.MemorySpace.SMEM),    # bias scalar
        ],
        out_specs=pl.BlockSpec((1, tb), lambda i: (0, i)),        # lane-dense output
        compiler_params=pltpu.CompilerParams(
            dimension_semantics=("parallel",)),                   # shard batch tiles across TCs
    )(x_flat, scores, pool, bias)
    return out_row.reshape(B, 1)


def _forward_onehot(x_tokens, scores, bias, B, S, tb):
    V = scores.shape[1]
    vt = min(V, 4096)                                    # bounded one-hot tile
    v_pad = ((V + vt - 1) // vt) * vt
    if v_pad != V:
        scores = jnp.pad(scores, ((0, 0), (0, v_pad - V)))   # padded rows never match a token
    x_flat = x_tokens.reshape(1, B * S).astype(jnp.int32)
    pool = _segment_pool(tb, S)
    out_row = pl.pallas_call(
        _onehot_kernel,
        out_shape=jax.ShapeDtypeStruct((1, B), jnp.float32),
        grid=(B // tb, v_pad // vt),
        in_specs=[
            pl.BlockSpec((1, tb * S), lambda i, k: (0, i)),       # token tile
            pl.BlockSpec((1, vt), lambda i, k: (0, k)),           # scores V-tile
            pl.BlockSpec((tb * S, tb), lambda i, k: (0, 0)),      # pool mask (constant)
            pl.BlockSpec(memory_space=pltpu.MemorySpace.SMEM),    # bias scalar
        ],
        out_specs=pl.BlockSpec((1, tb), lambda i, k: (0, i)),     # accumulator across k
        compiler_params=pltpu.CompilerParams(
            dimension_semantics=("parallel", "arbitrary")),
    )(x_flat, scores, pool, bias)
    return out_row.reshape(B, 1)


_USE_TAKE_PATH = None   # resolved (and cached) on the first call


def neural_regressor(x_tokens, emb_table, fc_w, fc_b, *, batch_tile=None):
    """x_tokens: (B, S) int ids; emb_table: (V, D); fc_w: (1, D); fc_b: (1,)."""
    global _USE_TAKE_PATH
    B, S = x_tokens.shape
    V, D = emb_table.shape

    # Fold the Linear weight AND the 1/S of the average pool into per-token
    # scores once, outside the kernel (exact rewrite; the (V, D) table never
    # enters the kernel).
    scores = (jnp.dot(emb_table.astype(jnp.float32),
                      fc_w.astype(jnp.float32).T) / S).reshape(1, V)
    bias = fc_b.reshape(1, 1).astype(jnp.float32)

    tb = batch_tile if batch_tile is not None else _default_batch_tile(B, S)
    assert B % tb == 0, "batch_tile must divide B"
    if tb < B:
        # Partial blocks must satisfy the (8, 128) lane constraint and keep the
        # (1, tb) output store a full-lane (unmasked) vst.
        assert tb % 128 == 0, "batch_tile must be a multiple of 128 when < B"

    if _USE_TAKE_PATH is not False:
        try:
            out = _forward_take(x_tokens, scores, bias, B, S, tb)
            _USE_TAKE_PATH = True
            return out
        except Exception:
            # Mosaic dynamic-gather / int16 support varies across jax versions
            # and TPU generations; fall back to the V-tiled one-hot kernel
            # (the review's prescribed contingency).
            _USE_TAKE_PATH = False
    return _forward_onehot(x_tokens, scores, bias, B, S, tb)


if __name__ == "__main__":
    # Small shapes consistent with the module.
    vocab_size, embedding_dim = 32, 32
    batch, seq = 4, 8

    key = jax.random.PRNGKey(0)
    k_x, k_emb, k_w, k_b = jax.random.split(key, 4)

    # Token ids, with some explicit padding (index 0) positions.
    x = jax.random.randint(k_x, (batch, seq), 0, vocab_size, dtype=jnp.int32)
    x = x.at[:, -2:].set(0)

    # nn.Embedding init ~ N(0, 1), padding_idx=0 row zeroed (as PyTorch init does).
    emb_table = jax.random.normal(k_emb, (vocab_size, embedding_dim), dtype=jnp.float32)
    emb_table = emb_table.at[0].set(0.0)

    # nn.Linear(embedding_dim, 1) init ~ U(-1/sqrt(D), 1/sqrt(D)).
    bound = 1.0 / (embedding_dim ** 0.5)
    fc_w = jax.random.uniform(k_w, (1, embedding_dim), minval=-bound, maxval=bound,
                              dtype=jnp.float32)
    fc_b = jax.random.uniform(k_b, (1,), minval=-bound, maxval=bound, dtype=jnp.float32)

    out = jax.block_until_ready(neural_regressor(x, emb_table, fc_w, fc_b))

    # Pure-JAX reference of the PyTorch forward.
    ref_embedded = emb_table[x]                         # (B, S, D)
    ref_pooled = ref_embedded.mean(axis=1)              # (B, D)
    ref_out = ref_pooled @ fc_w.T + fc_b                # (B, 1)

    assert out.shape == (batch, 1)
    assert jnp.allclose(out, ref_out, atol=1e-5, rtol=1e-5), (out, ref_out)
    print("KERNEL_OK")
</pallas_src>

<mosaic_0001>
module attributes {stable_mosaic.version = 11 : i64} {
  func.func @_onehot_kernel(%arg0: i32, %arg1: i32, %arg2: memref<1x32xi32, #tpu.memory_space<vmem>>, %arg3: memref<1x32xf32, #tpu.memory_space<vmem>>, %arg4: memref<32x4xf32, #tpu.memory_space<vmem>>, %arg5: memref<1x1xf32, #tpu.memory_space<smem>>, %arg6: memref<1x4xf32, #tpu.memory_space<vmem>>) attributes {dimension_semantics = [#tpu.dimension_semantics<parallel>, #tpu.dimension_semantics<arbitrary>], iteration_bounds = array<i64: 1, 1>, scalar_prefetch = 0 : i64, scratch_operands = 0 : i64, tpu.core_type = #tpu.core_type<tc>, window_params = [{transform_indices = @transform_0, window_bounds = array<i64: 1, 32>}, {transform_indices = @transform_1, window_bounds = array<i64: 1, 32>}, {pipeline_mode = #tpu.pipeline_mode<synchronous>, transform_indices = @transform_2, window_bounds = array<i64: 32, 4>}, {transform_indices = @transform_3, window_bounds = array<i64: 1, 1>}, {transform_indices = @transform_4, window_bounds = array<i64: 1, 4>}]} {
    %c0_i32 = arith.constant 0 : i32
    %0 = arith.cmpi eq, %arg1, %c0_i32 : i32
    %1 = arith.extui %0 : i1 to i32
    %c0_i32_0 = arith.constant 0 : i32
    %2 = arith.cmpi ne, %1, %c0_i32_0 : i32
    scf.if %2 {
      %cst_11 = arith.constant 0.000000e+00 : f32
      %19 = vector.broadcast %cst_11 : f32 to vector<1x4xf32>
      %c0_12 = arith.constant 0 : index
      %c0_13 = arith.constant 0 : index
      %20 = memref.load %arg5[%c0_12, %c0_13] : memref<1x1xf32, #tpu.memory_space<smem>>
      %21 = vector.broadcast %20 : f32 to vector<1x4xf32>
      %22 = arith.addf %19, %21 : vector<1x4xf32>
      %c0_14 = arith.constant 0 : index
      %c0_15 = arith.constant 0 : index
      %23 = vector.load %arg6[%c0_14, %c0_15] : memref<1x4xf32, #tpu.memory_space<vmem>>, vector<1x4xf32>
      tpu.vector_store %arg6[%c0_14, %c0_15], %22 {strides = array<i32>} : memref<1x4xf32, #tpu.memory_space<vmem>>, vector<1x4xf32>,
    } else {
    }
    %c32_i32 = arith.constant 32 : i32
    %3 = arith.muli %arg1, %c32_i32 : i32
    %4 = tpu.iota {dimensions = array<i32: 0>} : vector<32x32xi32>
    %5 = vector.broadcast %3 : i32 to vector<32x32xi32>
    %6 = arith.addi %5, %4 : vector<32x32xi32>
    %c0 = arith.constant 0 : index
    %c0_1 = arith.constant 0 : index
    %7 = vector.load %arg2[%c0, %c0_1] : memref<1x32xi32, #tpu.memory_space<vmem>>, vector<1x32xi32>
    %8 = vector.broadcast %7 : vector<1x32xi32> to vector<32x32xi32>
    %9 = arith.cmpi eq, %8, %6 : vector<32x32xi32>
    %10 = arith.extui %9 : vector<32x32xi1> to vector<32x32xi32>
    %11 = arith.sitofp %10 : vector<32x32xi32> to vector<32x32xf32>
    %c0_2 = arith.constant 0 : index
    %c0_3 = arith.constant 0 : index
    %12 = vector.load %arg3[%c0_2, %c0_3] : memref<1x32xf32, #tpu.memory_space<vmem>>, vector<1x32xf32>
    %cst = arith.constant dense<0.000000e+00> : vector<1x32xf32>
    %13 = tpu.matmul %12, %11, %cst {dimension_numbers = #tpu.dot_dimension_numbers<[1], [0], [0], [1], [0, 0, 1, 1], [], []>} : vector<1x32xf32>, vector<32x32xf32>, vector<1x32xf32> -> vector<1x32xf32>
    %c0_4 = arith.constant 0 : index
    %c0_5 = arith.constant 0 : index
    %14 = vector.load %arg6[%c0_4, %c0_5] : memref<1x4xf32, #tpu.memory_space<vmem>>, vector<1x4xf32>
    %c0_6 = arith.constant 0 : index
    %c0_7 = arith.constant 0 : index
    %15 = vector.load %arg4[%c0_6, %c0_7] : memref<32x4xf32, #tpu.memory_space<vmem>>, vector<32x4xf32>
    %cst_8 = arith.constant dense<0.000000e+00> : vector<1x4xf32>
    %16 = tpu.matmul %13, %15, %cst_8 {dimension_numbers = #tpu.dot_dimension_numbers<[1], [0], [0], [1], [0, 0, 1, 1], [], []>} : vector<1x32xf32>, vector<32x4xf32>, vector<1x4xf32> -> vector<1x4xf32>
    %17 = arith.addf %14, %16 : vector<1x4xf32>
    %c0_9 = arith.constant 0 : index
    %c0_10 = arith.constant 0 : index
    %18 = vector.load %arg6[%c0_9, %c0_10] : memref<1x4xf32, #tpu.memory_space<vmem>>, vector<1x4xf32>
    tpu.vector_store %arg6[%c0_9, %c0_10], %17 {strides = array<i32>} : memref<1x4xf32, #tpu.memory_space<vmem>>, vector<1x4xf32>,
    return
  }
  func.func @transform_0(%arg0: i32, %arg1: i32) -> (i32, i32) {
    %c0_i32 = arith.constant 0 : i32
    %c0_i32_0 = arith.constant 0 : i32
    return %c0_i32, %arg0 : i32, i32
  }
  func.func @transform_1(%arg0: i32, %arg1: i32) -> (i32, i32) {
    %c0_i32 = arith.constant 0 : i32
    %c0_i32_0 = arith.constant 0 : i32
    return %c0_i32, %arg1 : i32, i32
  }
  func.func @transform_2(%arg0: i32, %arg1: i32) -> (i32, i32) {
    %c0_i32 = arith.constant 0 : i32
    %c0_i32_0 = arith.constant 0 : i32
    %c0_i32_1 = arith.constant 0 : i32
    return %c0_i32, %c0_i32_0 : i32, i32
  }
  func.func @transform_3(%arg0: i32, %arg1: i32) -> (i32, i32) {
    %c0_i32 = arith.constant 0 : i32
    %c0_i32_0 = arith.constant 0 : i32
    %c0_i32_1 = arith.constant 0 : i32
    return %c0_i32, %c0_i32_0 : i32, i32
  }
  func.func @transform_4(%arg0: i32, %arg1: i32) -> (i32, i32) {
    %c0_i32 = arith.constant 0 : i32
    %c0_i32_0 = arith.constant 0 : i32
    return %c0_i32, %arg0 : i32, i32
  }
}

</mosaic_0001>

<bundles_post_ra>
// kernel: tpu_custom_call.1
= control target key start
LH: loop header
LB: loop body
LE: loop exit
PB: predicated region body
PF: predicated region fallthrough
CT: control target
= control target key end

     0   :  { %v29_v0 = vlaneseq  ;;  %v310_v1 = vmov 0.0|0.0   ;;  %vm311_vm0 = vmmov 0   ;;  %v312_v6 = vmov 0.0   ;;  %s373_s0 = inlined_call_operand.vmem [shape: s32[1,32], index: 0, kind: input, shape index: {}]   ;;  %s374_s1 = inlined_call_operand.vmem [shape: f32[1,32], index: 1, kind: input, shape index: {}]   ;;  %s375_s2 = inlined_call_operand.vmem [shape: f32[32,4], index: 2, kind: input, shape index: {}]   ;;  %s376_s3 = inlined_call_operand.<no memory space> [shape: f32[1,1], index: 3, kind: input, shape index: {}]   ;;  %s377_s4 = inlined_call_operand.hbm [shape: f32[1,4], index: 4, kind: output, shape index: {}]  }
   0x1   :  { %269 = vmatprep.subr.bf16.mxu0 %v310_v1  ;;  %v226_v2 = vld [vmem:[%s373_s0] ss:$0 sm:$0xff]  ;;  %275 = vmatprep.subr.bf16.mxu1 %v310_v1  ;;  %v133_v4 = vld [vmem:[%s375_s2 + $0x8] sm:$0xff]  ;;  %v134_v8 = vld [vmem:[%s375_s2 + $0x10] sm:$0xff] }
   0x2   :  { %v132_v3 = vld [vmem:[%s375_s2] sm:$0xff]  ;;  %v30_v5 = vshrl.u32 %v29_v0, 7  ;;  %255 = vmatprep.mubr.msk.f32.mxu0 %vm311_vm0, %v312_v6  ;;  %v135_v9 = vld [vmem:[%s375_s2 + $0x18] sm:$0xff]  ;;  %266 = vmatprep.mubr.msk.f32.mxu1 %vm311_vm0, %v312_v6 }
   0x3   :  { %v276_v7 = vpack.c.bf16 %v133_v4, %v132_v3 }
   0x4   :  { %10 = vsyncpa [#allocation4], 0  ;;  %v279_v10 = vpack.c.bf16 %v135_v9, %v134_v8  ;;  %v31_v11 = vadd.s32 8, %v30_v5  ;;  %vm44_vm1 = vcmp.eq.s32.totalorder %v226_v2, %v30_v5  ;;  %v32_v12 = vadd.s32 16, %v30_v5  ;;  %v56_v15 = vld [vmem:[%s374_s1] sm:$0x1] }
   0x5   :  { %v33_v13 = vadd.s32 24, %v30_v5  ;;  %277 = vmatpush3.bf16.msra.mxu1 %v276_v7  ;;  %v313_v14 = vmov 1.0|1.0   ;;  %vm57_vm7 = vcmask 261120   ;;  %v24_v16 = vstv %s376_s3  ;;  %s314_s27 = smov [#allocation3]  }
   0x6   :  { %278 = vmatprep.subr.bf16.mxu1 %v310_v1  ;;  %vm45_vm2 = vcmp.eq.s32.totalorder %v226_v2, %v31_v11  ;;  %vm46_vm3 = vcmp.eq.s32.totalorder %v226_v2, %v32_v12  ;;  %vm26_vm8 = vcmask 24576   ;;  %s218_s28 = sshll.u32 %s314_s27, 4  ;;  %s219_s28 = int_to_ptr.vmem [resolvable:$true] %s218_s28 }
   0x7   :  { %vm47_vm4 = vcmp.eq.s32.totalorder %v226_v2, %v33_v13  ;;  %vm270_vm5 = vmpackc.low %vm45_vm2, %vm44_vm1  ;;  %27 = vst.msk [vmem:[#allocation3] sm:$0x1] %vm26_vm8, %v24_v16  ;;  %s286_s1 = scalar_lea.vmem %s219_s28, 16  ;;  %s290_s29 = scalar_lea.vmem %s219_s28, 32 }
   0x8   :  { %271 = vmatpush3.bf16.msk.msra.mxu0 %vm270_vm5, %v313_v14  ;;  %vm273_vm6 = vmpackc.low %vm47_vm4, %vm46_vm3  ;;  %p287_p0 = scmp.ne.s32.totalorder %s219_s28, %s286_s1  ;;  %p291_p1 = scmp.lt.s32.totalorder %s219_s28, %s219_s28 }
   0x9   :  { %280 = vmatpush3.bf16.msra.mxu1 %v279_v10  ;;  %272 = vmatprep.subr.bf16.mxu0 %v310_v1  ;;  %p292_p2 = scmp.lt.s32.totalorder %s290_s29, %s286_s1 }
   0xb   :  { %p293_p3 = por %p292_p2, %p291_p1 }
   0xc   :  { %274 = vmatpush3.bf16.msk.msra.mxu0 %vm273_vm6, %v313_v14 }
   0xd   :  { %p294_p4 = pnand %p293_p3, %p287_p0 }
   0xe   :  { %v131_v19 = vld [vmem:[#allocation3] sm:$0x1] }
   0xf   :  { %256 = vmatmul.mubr.msk.f32.vlgmr.msra.gmra.mrb[0].mxu0 %vm57_vm7, %v56_v15 }
  0xe2   :  { %v127_v17 = vpop.f32.mrb[0].mxu0 }
  0xe3   :  { %v257_v18 = vpop.f32.mrb[1].mxu0  ;;  %267 = vmatmul.mubr.msk.f32.vlgmr.msra.gmra.mrb[0].mxu1 %vm57_vm7, %v127_v17 }
 0x1b6   :  { %v205_v20 = vpop.f32.mrb[0].mxu1 }
 0x1b7   :  { %v209_v21 = vadd.f32 %v205_v20, %v131_v19  ;;  %v268_v22 = vpop.f32.mrb[1].mxu1 }
 0x1b9   :  { %211 = vst.msk [vmem:[#allocation3] sm:$0x1] %vm26_vm8, %v209_v21 }
 0x1ba   :  { %297 = shalt.err (!%p294_p4)
}
 0x1bb   :  { %s298_s5 = scalar_lea.hbm %s377_s4, 16 }
 0x1bc   :  { %p299_p5 = scmp.ne.s32.totalorder %s377_s4, %s298_s5  ;;  %p302_p6 = scmp.lt.u32.totalorder %s298_s5, %s377_s4 }
 0x1be   :  { %p304_p7 = pnand %p302_p6, %p299_p5 }
 0x1c0   :  { %307 = shalt.err (!%p304_p7)
}
 0x1c1   :  { %221 = dma.vmem_to_hbm [thread:$0]  %s219_s28, 16, %s377_s4, [#allocation4]  }
 0x1c2   :  { %308 = dma.done.wait [#allocation4], 16  }
 0x1c3   :  { %309 = vsyncadd [#allocation4], 4294967280 }
 0x1c4   :  { %225 = vsyncpa [#allocation4], 1 }

</bundles_post_ra>
